<compile_context>
chip_gen: v5e
topology: v5e:2x2
jax: 0.10.0
libtpu: 0.0.40
codegen_flags: <defaults>
</compile_context>

<pallas_src>
import jax
import jax.numpy as jnp
from jax.experimental import pallas as pl
from jax.experimental.pallas import tpu as pltpu

DIM = 16
HIDDEN = 32
BATCH = 16
NUM_VECTORS = 3

# ---- row offsets inside the packed constant slabs (each section 8-row aligned) ----
# slab_h: lane width = HIDDEN (32)
_W1T_OFF = 0                           # [DIM, HIDDEN]
_B1_OFF = _W1T_OFF + DIM               # 16   [1, HIDDEN] (padded to 8 rows)
_W2T_OFF = _B1_OFF + 8                 # 24   [HIDDEN, HIDDEN]
_B2_OFF = _W2T_OFF + HIDDEN            # 56   [1, HIDDEN] (padded to 8 rows)
_W2_OFF = _B2_OFF + 8                  # 64   [HIDDEN, HIDDEN]
_U3_OFF = _W2_OFF + HIDDEN             # 96   [1, HIDDEN] (padded to 8 rows)
SLAB_H_ROWS = _U3_OFF + 8              # 104
# slab_d: lane width = DIM (16)
_W3T_OFF = 0                           # [HIDDEN, DIM]
_B3_OFF = _W3T_OFF + HIDDEN            # 32   [1, DIM] (padded to 8 rows)
_W1_OFF = _B3_OFF + 8                  # 40   [HIDDEN, DIM]
SLAB_D_ROWS = _W1_OFF + HIDDEN         # 72


def odefunc_kernel(x_ref, sh_ref, sd_ref, out_ref):
    # Batch-blocked input: cols [0:DIM] = z, col [DIM] = log_det (unused),
    # cols [DIM+1 : 2*DIM+1] = pre-averaged epsilon.
    z = x_ref[:, :DIM]                                   # [TB, D]
    eps_mean = x_ref[:, DIM + 1:]                        # [TB, D]

    # Static slices of the two constant slabs (aligned, zero-cost views).
    w1t = sh_ref[_W1T_OFF:_W1T_OFF + DIM, :]             # [D, H]
    b1 = sh_ref[_B1_OFF:_B1_OFF + 1, :]                  # [1, H]
    w2t = sh_ref[_W2T_OFF:_W2T_OFF + HIDDEN, :]          # [H, H]
    b2 = sh_ref[_B2_OFF:_B2_OFF + 1, :]                  # [1, H]
    w2 = sh_ref[_W2_OFF:_W2_OFF + HIDDEN, :]             # [H, H]
    u3 = sh_ref[_U3_OFF:_U3_OFF + 1, :]                  # [1, H]
    w3t = sd_ref[_W3T_OFF:_W3T_OFF + HIDDEN, :]          # [H, D]
    b3 = sd_ref[_B3_OFF:_B3_OFF + 1, :]                  # [1, D]
    w1 = sd_ref[_W1_OFF:_W1_OFF + HIDDEN, :]             # [H, D]

    # ---- forward MLP: Linear -> tanh -> Linear -> tanh -> Linear (MXU + EUP) ----
    h1 = jnp.tanh(jnp.dot(z, w1t, preferred_element_type=jnp.float32) + b1)
    h2 = jnp.tanh(jnp.dot(h1, w2t, preferred_element_type=jnp.float32) + b2)
    dz = jnp.dot(h2, w3t, preferred_element_type=jnp.float32) + b3

    # ---- grad of sum(net(z)) w.r.t. z, closed form (plain row-major matmuls) ----
    g2 = (1.0 - h2 * h2) * u3                            # [TB, H]
    g1 = (1.0 - h1 * h1) * jnp.dot(g2, w2, preferred_element_type=jnp.float32)
    jvp = jnp.dot(g1, w1, preferred_element_type=jnp.float32)   # [TB, D]

    # ---- fused output: dz in cols [:DIM], trace in col [DIM:] ----
    out_ref[:, :DIM] = dz
    out_ref[:, DIM:] = jnp.sum(jvp * eps_mean, axis=1, keepdims=True)


def ode_func_pallas(aug, slab_h, slab_d, eps_mean, *, tb=None):
    """aug: [B, DIM+1]; eps_mean: [B, DIM]; returns [B, DIM+1]."""
    b = aug.shape[0]
    if tb is None:
        tb = b                       # single grid step at this problem size

    x = jnp.concatenate([aug, eps_mean], axis=1)         # [B, 2*DIM+1]
    pad = (-b) % tb
    if pad:
        x = jnp.pad(x, ((0, pad), (0, 0)))               # keep partial block defined
    bp = b + pad
    grid = (bp // tb,)

    cost = pl.CostEstimate(
        flops=2 * bp * (DIM * HIDDEN + HIDDEN * HIDDEN + HIDDEN * DIM
                        + HIDDEN * HIDDEN + HIDDEN * DIM),
        transcendentals=2 * bp * HIDDEN,
        bytes_accessed=4 * (bp * (2 * DIM + 1) + bp * (DIM + 1)
                            + SLAB_H_ROWS * HIDDEN + SLAB_D_ROWS * DIM),
    )

    out = pl.pallas_call(
        odefunc_kernel,
        grid=grid,
        in_specs=[
            pl.BlockSpec((tb, 2 * DIM + 1), lambda i: (i, 0)),     # batch slab
            pl.BlockSpec((SLAB_H_ROWS, HIDDEN), lambda i: (0, 0)), # const slab (H lanes)
            pl.BlockSpec((SLAB_D_ROWS, DIM), lambda i: (0, 0)),    # const slab (D lanes)
        ],
        out_specs=pl.BlockSpec((tb, DIM + 1), lambda i: (i, 0)),
        out_shape=jax.ShapeDtypeStruct((bp, DIM + 1), jnp.float32),
        compiler_params=pltpu.CompilerParams(
            dimension_semantics=("arbitrary",)),
        cost_estimate=cost,
    )(x, slab_h, slab_d)

    return out[:b]


def ode_func_ref(aug, fwd_params, eps):
    """Pure-JAX reference mirroring the torch forward pass (full 3-draw loop)."""
    w1t, b1, w2t, b2, w3t, b3 = fwd_params
    z = aug[:, :DIM]
    h1 = jnp.tanh(z @ w1t + b1)
    h2 = jnp.tanh(h1 @ w2t + b2)
    dz = h2 @ w3t + b3
    u3 = jnp.sum(w3t, axis=1)[None, :]
    g2 = (1.0 - h2 ** 2) * u3
    g1 = (1.0 - h1 ** 2) * (g2 @ w2t.T)
    jvp = g1 @ w1t.T
    per_draw = jnp.sum(jvp[None, :, :] * eps, axis=2)             # [3, B]
    trace = jnp.mean(per_draw, axis=0)[:, None]                   # [B, 1]
    return jnp.concatenate([dz, trace], axis=1)


def xavier_normal(key, fan_out, fan_in, gain):
    std = gain * jnp.sqrt(2.0 / (fan_in + fan_out))
    return std * jax.random.normal(key, (fan_out, fan_in), jnp.float32)


def _pad_rows(a, rows):
    return jnp.pad(a, ((0, rows - a.shape[0]), (0, 0)))


if __name__ == "__main__":
    key = jax.random.PRNGKey(0)
    k_aug, k_w1, k_w2, k_w3, k_eps = jax.random.split(key, 5)

    # PyTorch Linear stores weight as [out, in]; we bake both the transpose
    # (forward) and the original (backward) into the constant slabs so every
    # in-kernel contraction is a plain row-major matmul.
    # NOTE: the original module zero-inits the final Linear (making the whole
    # output identically 0); we use Xavier gain=0.1 on all three layers so the
    # hot path is actually exercised. Shapes match the module's __init__.
    w1 = xavier_normal(k_w1, HIDDEN, DIM, 0.1)        # [H, D]
    w2 = xavier_normal(k_w2, HIDDEN, HIDDEN, 0.1)     # [H, H]
    w3 = xavier_normal(k_w3, DIM, HIDDEN, 0.1)        # [D, H]
    b1 = jnp.zeros((1, HIDDEN), jnp.float32)
    b2 = jnp.zeros((1, HIDDEN), jnp.float32)
    b3 = jnp.zeros((1, DIM), jnp.float32)

    w1t, w2t, w3t = w1.T, w2.T, w3.T                  # [D,H], [H,H], [H,D]
    u3 = jnp.sum(w3t, axis=1)[None, :]                # W3^T @ 1 -> [1, H]

    # Packed constant slabs (built once; every section starts on an 8-row boundary).
    slab_h = jnp.concatenate(
        [w1t, _pad_rows(b1, 8), w2t, _pad_rows(b2, 8), w2, _pad_rows(u3, 8)],
        axis=0)                                       # [104, 32]
    slab_d = jnp.concatenate(
        [w3t, _pad_rows(b3, 8), w1], axis=0)          # [72, 16]
    assert slab_h.shape == (SLAB_H_ROWS, HIDDEN)
    assert slab_d.shape == (SLAB_D_ROWS, DIM)

    fwd_params = (w1t, b1, w2t, b2, w3t, b3)

    # Inputs: augmented state [B, DIM + 1] and the 3 Hutchinson-style probe vectors.
    # TODO(synk): torch.randn_like's RNG stream cannot be reproduced bit-exactly;
    # we draw the epsilons with jax.random instead (same distribution/semantics).
    aug = jax.random.normal(k_aug, (BATCH, DIM + 1), jnp.float32)
    eps = jax.random.normal(k_eps, (NUM_VECTORS, BATCH, DIM), jnp.float32)
    # jvp is eps-independent, so the 3-draw mean collapses to one dot with eps_mean.
    eps_mean = jnp.mean(eps, axis=0)                  # [B, D]

    out = jax.block_until_ready(ode_func_pallas(aug, slab_h, slab_d, eps_mean))
    ref = ode_func_ref(aug, fwd_params, eps)

    assert out.shape == (BATCH, DIM + 1)
    assert jnp.allclose(out, ref, atol=1e-5, rtol=1e-5)
    print("KERNEL_OK")
</pallas_src>

<mosaic_0001>
module attributes {stable_mosaic.version = 11 : i64} {
  func.func @odefunc_kernel(%arg0: i32, %arg1: memref<16x33xf32, #tpu.memory_space<vmem>>, %arg2: memref<104x32xf32, #tpu.memory_space<vmem>>, %arg3: memref<72x16xf32, #tpu.memory_space<vmem>>, %arg4: memref<16x17xf32, #tpu.memory_space<vmem>>) attributes {dimension_semantics = [#tpu.dimension_semantics<arbitrary>], iteration_bounds = array<i64: 1>, scalar_prefetch = 0 : i64, scratch_operands = 0 : i64, tpu.core_type = #tpu.core_type<tc>, window_params = [{transform_indices = @transform_0, window_bounds = array<i64: 16, 33>}, {pipeline_mode = #tpu.pipeline_mode<synchronous>, transform_indices = @transform_1, window_bounds = array<i64: 104, 32>}, {pipeline_mode = #tpu.pipeline_mode<synchronous>, transform_indices = @transform_2, window_bounds = array<i64: 72, 16>}, {transform_indices = @transform_3, window_bounds = array<i64: 16, 17>}]} {
    %c0 = arith.constant 0 : index
    %c0_0 = arith.constant 0 : index
    %0 = vector.load %arg1[%c0, %c0_0] : memref<16x33xf32, #tpu.memory_space<vmem>>, vector<16x16xf32>
    %c0_1 = arith.constant 0 : index
    %c17 = arith.constant 17 : index
    %1 = vector.load %arg1[%c0_1, %c17] : memref<16x33xf32, #tpu.memory_space<vmem>>, vector<16x16xf32>
    %c0_2 = arith.constant 0 : index
    %c0_3 = arith.constant 0 : index
    %2 = vector.load %arg2[%c0_2, %c0_3] : memref<104x32xf32, #tpu.memory_space<vmem>>, vector<16x32xf32>
    %c16 = arith.constant 16 : index
    %c0_4 = arith.constant 0 : index
    %3 = vector.load %arg2[%c16, %c0_4] : memref<104x32xf32, #tpu.memory_space<vmem>>, vector<1x32xf32>
    %c24 = arith.constant 24 : index
    %c0_5 = arith.constant 0 : index
    %4 = vector.load %arg2[%c24, %c0_5] : memref<104x32xf32, #tpu.memory_space<vmem>>, vector<32x32xf32>
    %c56 = arith.constant 56 : index
    %c0_6 = arith.constant 0 : index
    %5 = vector.load %arg2[%c56, %c0_6] : memref<104x32xf32, #tpu.memory_space<vmem>>, vector<1x32xf32>
    %c64 = arith.constant 64 : index
    %c0_7 = arith.constant 0 : index
    %6 = vector.load %arg2[%c64, %c0_7] : memref<104x32xf32, #tpu.memory_space<vmem>>, vector<32x32xf32>
    %c96 = arith.constant 96 : index
    %c0_8 = arith.constant 0 : index
    %7 = vector.load %arg2[%c96, %c0_8] : memref<104x32xf32, #tpu.memory_space<vmem>>, vector<1x32xf32>
    %c0_9 = arith.constant 0 : index
    %c0_10 = arith.constant 0 : index
    %8 = vector.load %arg3[%c0_9, %c0_10] : memref<72x16xf32, #tpu.memory_space<vmem>>, vector<32x16xf32>
    %c32 = arith.constant 32 : index
    %c0_11 = arith.constant 0 : index
    %9 = vector.load %arg3[%c32, %c0_11] : memref<72x16xf32, #tpu.memory_space<vmem>>, vector<1x16xf32>
    %c40 = arith.constant 40 : index
    %c0_12 = arith.constant 0 : index
    %10 = vector.load %arg3[%c40, %c0_12] : memref<72x16xf32, #tpu.memory_space<vmem>>, vector<32x16xf32>
    %cst = arith.constant dense<0.000000e+00> : vector<16x32xf32>
    %11 = tpu.matmul %0, %2, %cst {dimension_numbers = #tpu.dot_dimension_numbers<[1], [0], [0], [1], [0, 0, 1, 1], [], []>} : vector<16x16xf32>, vector<16x32xf32>, vector<16x32xf32> -> vector<16x32xf32>
    %12 = vector.broadcast %3 : vector<1x32xf32> to vector<16x32xf32>
    %13 = arith.addf %11, %12 : vector<16x32xf32>
    %14 = math.tanh %13 : vector<16x32xf32>
    %cst_13 = arith.constant dense<0.000000e+00> : vector<16x32xf32>
    %15 = tpu.matmul %14, %4, %cst_13 {dimension_numbers = #tpu.dot_dimension_numbers<[1], [0], [0], [1], [0, 0, 1, 1], [], []>} : vector<16x32xf32>, vector<32x32xf32>, vector<16x32xf32> -> vector<16x32xf32>
    %16 = vector.broadcast %5 : vector<1x32xf32> to vector<16x32xf32>
    %17 = arith.addf %15, %16 : vector<16x32xf32>
    %18 = math.tanh %17 : vector<16x32xf32>
    %cst_14 = arith.constant dense<0.000000e+00> : vector<16x16xf32>
    %19 = tpu.matmul %18, %8, %cst_14 {dimension_numbers = #tpu.dot_dimension_numbers<[1], [0], [0], [1], [0, 0, 1, 1], [], []>} : vector<16x32xf32>, vector<32x16xf32>, vector<16x16xf32> -> vector<16x16xf32>
    %20 = vector.broadcast %9 : vector<1x16xf32> to vector<16x16xf32>
    %21 = arith.addf %19, %20 : vector<16x16xf32>
    %22 = arith.mulf %18, %18 : vector<16x32xf32>
    %cst_15 = arith.constant 1.000000e+00 : f32
    %23 = vector.broadcast %cst_15 : f32 to vector<16x32xf32>
    %24 = arith.subf %23, %22 : vector<16x32xf32>
    %25 = vector.broadcast %7 : vector<1x32xf32> to vector<16x32xf32>
    %26 = arith.mulf %24, %25 : vector<16x32xf32>
    %27 = arith.mulf %14, %14 : vector<16x32xf32>
    %cst_16 = arith.constant 1.000000e+00 : f32
    %28 = vector.broadcast %cst_16 : f32 to vector<16x32xf32>
    %29 = arith.subf %28, %27 : vector<16x32xf32>
    %cst_17 = arith.constant dense<0.000000e+00> : vector<16x32xf32>
    %30 = tpu.matmul %26, %6, %cst_17 {dimension_numbers = #tpu.dot_dimension_numbers<[1], [0], [0], [1], [0, 0, 1, 1], [], []>} : vector<16x32xf32>, vector<32x32xf32>, vector<16x32xf32> -> vector<16x32xf32>
    %31 = arith.mulf %29, %30 : vector<16x32xf32>
    %cst_18 = arith.constant dense<0.000000e+00> : vector<16x16xf32>
    %32 = tpu.matmul %31, %10, %cst_18 {dimension_numbers = #tpu.dot_dimension_numbers<[1], [0], [0], [1], [0, 0, 1, 1], [], []>} : vector<16x32xf32>, vector<32x16xf32>, vector<16x16xf32> -> vector<16x16xf32>
    %c0_19 = arith.constant 0 : index
    %c0_20 = arith.constant 0 : index
    %33 = vector.load %arg4[%c0_19, %c0_20] : memref<16x17xf32, #tpu.memory_space<vmem>>, vector<16x16xf32>
    tpu.vector_store %arg4[%c0_19, %c0_20], %21 {strides = array<i32>} : memref<16x17xf32, #tpu.memory_space<vmem>>, vector<16x16xf32>,
    %34 = arith.mulf %32, %1 : vector<16x16xf32>
    %cst_21 = arith.constant dense<0.000000e+00> : vector<16xf32>
    %35 = vector.multi_reduction <add>, %34, %cst_21 [1] : vector<16x16xf32> to vector<16xf32>
    %36 = vector.shape_cast %35 : vector<16xf32> to vector<16x1xf32>
    %c0_22 = arith.constant 0 : index
    %c16_23 = arith.constant 16 : index
    %37 = vector.load %arg4[%c0_22, %c16_23] : memref<16x17xf32, #tpu.memory_space<vmem>>, vector<16x1xf32>
    tpu.vector_store %arg4[%c0_22, %c16_23], %36 {strides = array<i32>} : memref<16x17xf32, #tpu.memory_space<vmem>>, vector<16x1xf32>,
    return
  }
  func.func @transform_0(%arg0: i32) -> (i32, i32) {
    %c0_i32 = arith.constant 0 : i32
    %c0_i32_0 = arith.constant 0 : i32
    return %arg0, %c0_i32 : i32, i32
  }
  func.func @transform_1(%arg0: i32) -> (i32, i32) {
    %c0_i32 = arith.constant 0 : i32
    %c0_i32_0 = arith.constant 0 : i32
    %c0_i32_1 = arith.constant 0 : i32
    return %c0_i32, %c0_i32_0 : i32, i32
  }
  func.func @transform_2(%arg0: i32) -> (i32, i32) {
    %c0_i32 = arith.constant 0 : i32
    %c0_i32_0 = arith.constant 0 : i32
    %c0_i32_1 = arith.constant 0 : i32
    return %c0_i32, %c0_i32_0 : i32, i32
  }
  func.func @transform_3(%arg0: i32) -> (i32, i32) {
    %c0_i32 = arith.constant 0 : i32
    %c0_i32_0 = arith.constant 0 : i32
    return %arg0, %c0_i32 : i32, i32
  }
}

</mosaic_0001>

<bundles_post_ra>
// kernel: tpu_custom_call.1
= control target key start
LH: loop header
LB: loop body
LE: loop exit
PB: predicated region body
PF: predicated region fallthrough
CT: control target
= control target key end

     0   :  { %vm40_vm0 = vcmask 130048   ;;  %s418_s0 = inlined_call_operand.vmem [shape: f32[16,33], index: 0, kind: input, shape index: {}]   ;;  %s419_s1 = inlined_call_operand.vmem [shape: f32[104,32], index: 1, kind: input, shape index: {}]   ;;  %s420_s2 = inlined_call_operand.vmem [shape: f32[72,16], index: 2, kind: input, shape index: {}]   ;;  %s421_s3 = inlined_call_operand.hbm [shape: f32[16,17], index: 3, kind: output, shape index: {}]  }
   0x1   :  { %v18_v0 = vld [vmem:[%s419_s1 + $0x8] sm:$0xff]  ;;  %v17_v1 = vld [vmem:[%s419_s1] sm:$0xff] }
   0x2   :  { %61 = vmatpush.msra.mxu0 %v18_v0  ;;  %v330_v2 = vld [vmem:[%s418_s0] sm:$0xff]  ;;  %253 = vmatpush.msra.mxu1 %v18_v0  ;;  %v335_v3 = vld [vmem:[%s418_s0 + $0x8] sm:$0xff] }
   0x4   :  { %62 = vmatpush.msra.mxu0 %v17_v1  ;;  %254 = vmatpush.msra.mxu1 %v17_v1 }
   0x5   :  { %8 = vsyncpa [#allocation3], 0  ;;  %243 = vmatmul.msk.f32.vlgmr.msra.gmra.mxu0 %vm40_vm0, %v330_v2  ;;  %244 = vmatmul.msk.f32.vlgmr.msra.gmra.mxu1 %vm40_vm0, %v335_v3  ;;  %v23_v4 = vld [vmem:[%s419_s1 + $0x30] sm:$0xff]  ;;  %v22_v5 = vld [vmem:[%s419_s1 + $0x28] sm:$0xff]  ;;  %vm73_vm1 = vcmask 261120   ;;  %s297_s22 = smov 111  }
   0x6   :  { %92 = vmatpush.msrb.mxu1 %v23_v4  ;;  %v21_v6 = vld [vmem:[%s419_s1 + $0x20] sm:$0xff]  ;;  %v20_v7 = vld [vmem:[%s419_s1 + $0x18] sm:$0xff]  ;;  %v259_v8 = vld [vmem:[%s419_s1 + $0x10] ss:$0 sm:$0xff]  ;;  %208 = vrot.lane.b32.xlu0 %v330_v2, %s297_s22  ;;  %vm222_vm2 = vcmask 138368   ;;  %s231_s7 = sshll.u32 %s421_s3, 4  ;;  %s232_s7 = int_to_ptr.hbm [resolvable:$true] %s231_s7 }
   0x7   :  { %v33_v15 = vld [vmem:[%s420_s2 + $0x18] sm:$0xff]  ;;  %v32_v16 = vld [vmem:[%s420_s2 + $0x10] sm:$0xff]  ;;  %v31_v17 = vld [vmem:[%s420_s2 + $0x8] sm:$0xff]  ;;  %s299_s8 = smov 128   ;;  %s300_s9 = smov 8  }
   0x8   :  { %93 = vmatpush.msrb.mxu1 %v22_v5  ;;  %124 = vmatpush.msra.mxu2 %v33_v15  ;;  %v30_v18 = vld [vmem:[%s420_s2] sm:$0xff]  ;;  %v28_v19 = vld [vmem:[%s419_s1 + $0x58] sm:$0xff]  ;;  %v27_v20 = vld [vmem:[%s419_s1 + $0x50] sm:$0xff] }
   0x9   :  { %164 = vmatpush.msra.mxu3 %v28_v19  ;;  %v26_v21 = vld [vmem:[%s419_s1 + $0x48] sm:$0xff]  ;;  %v25_v22 = vld [vmem:[%s419_s1 + $0x40] sm:$0xff]  ;;  %v260_v23 = vld [vmem:[%s419_s1 + $0x38] ss:$0 sm:$0xff] }
   0xa   :  { %94 = vmatpush.msrb.mxu1 %v21_v6  ;;  %125 = vmatpush.msra.mxu2 %v32_v16  ;;  %v261_v30 = vld [vmem:[%s419_s1 + $0x60] ss:$0 sm:$0xff]  ;;  %v37_v38 = vld [vmem:[%s420_s2 + $0x38] sm:$0xff]  ;;  %v36_v39 = vld [vmem:[%s420_s2 + $0x30] sm:$0xff] }
   0xb   :  { %165 = vmatpush.msra.mxu3 %v27_v20  ;;  %v38_v37 = vld [vmem:[%s420_s2 + $0x40] sm:$0xff]  ;;  %v35_v40 = vld [vmem:[%s420_s2 + $0x28] sm:$0xff] }
   0xc   :  { %95 = vmatpush.msrb.mxu1 %v20_v7  ;;  %126 = vmatpush.msra.mxu2 %v31_v17  ;;  %v262_v41 = vld [vmem:[%s420_s2 + $0x20] ss:$0 sm:$0xff]  ;;  %s298_s2 = smov [#allocation2]  }
   0xd   :  { %166 = vmatpush.msra.mxu3 %v26_v21  ;;  %195 = vmatpush.msrb.mxu0 %v38_v37  ;;  %s229_s4 = sshll.u32 %s298_s2, 4  ;;  %s230_s4 = int_to_ptr.vmem [resolvable:$true] %s229_s4 }
   0xe   :  { %127 = vmatpush.msra.mxu2 %v30_v18  ;;  %210 = vrot.lane.b32.xlu0 %v335_v3, %s297_s22 }
   0xf   :  { %167 = vmatpush.msra.mxu3 %v25_v22  ;;  %196 = vmatpush.msrb.mxu0 %v37_v38 }
  0x11   :  { %197 = vmatpush.msrb.mxu0 %v36_v39 }
  0x13   :  { %198 = vmatpush.msrb.mxu0 %v35_v40 }
  0x78   :  { %v209_v54 = vpop.permute.xlu0 %208 }
  0x80   :  { %v211_v58 = vpop.permute.xlu0 %210 }
  0x82   :  { %v64_v9 = vpop.f32.mrf.mxu0  ;;  %v67_v11 = vpop.f32.mrf.mxu1 }
  0x83   :  { %v65_v10 = vadd.f32 %v259_v8, %v64_v9  ;;  %v68_v12 = vadd.f32 %v259_v8, %v67_v11 }
  0x85   :  { %263 = vtanh.f32 %v65_v10 }
  0x86   :  { %265 = vtanh.f32 %v68_v12 }
  0x8b   :  { %v264_v13 = vpop.eup %263 }
  0x8c   :  { %245 = vmatmul.msk.f32.vlgmr.msrb.gmra.mxu1 %vm73_vm1, %v264_v13  ;;  %v266_v14 = vpop.eup %265  ;;  %v142_v44 = vmul.f32 %v264_v13, %v264_v13 }
  0x8d   :  { %v143_v50 = vmul.f32 %v266_v14, %v266_v14 }
  0x8e   :  { %v144_v45 = vsub.f32 1.0, %v142_v44 }
  0x8f   :  { %v145_v51 = vsub.f32 1.0, %v143_v50 }
  0x94   :  { %246 = vmatmul.msk.f32.gmra.mxu1 %vm73_vm1, %v266_v14 }
 0x109   :  { %v97_v24 = vpop.f32.mrf.mxu1 }
 0x10a   :  { %v98_v25 = vadd.f32 %v260_v23, %v97_v24 }
 0x10c   :  { %267 = vtanh.f32 %v98_v25 }
 0x111   :  { %v100_v26 = vpop.f32.mrf.mxu1 }
 0x112   :  { %v268_v27 = vpop.eup %267  ;;  %v101_v28 = vadd.f32 %v260_v23, %v100_v26 }
 0x113   :  { %247 = vmatmul.msk.f32.vlgmr.msra.gmra.mxu2 %vm73_vm1, %v268_v27  ;;  %v135_v29 = vmul.f32 %v268_v27, %v268_v27 }
 0x114   :  { %269 = vtanh.f32 %v101_v28 }
 0x115   :  { %v137_v31 = vsub.f32 1.0, %v135_v29 }
 0x117   :  { %v140_v32 = vmul.f32 %v261_v30, %v137_v31 }
 0x119   :  { %249 = vmatmul.msk.f32.vlgmr.msra.gmra.mxu3 %vm73_vm1, %v140_v32 }
 0x11a   :  { %v270_v33 = vpop.eup %269 }
 0x11b   :  { %248 = vmatmul.msk.f32.gmra.mxu2 %vm73_vm1, %v270_v33  ;;  %v136_v34 = vmul.f32 %v270_v33, %v270_v33 }
 0x11d   :  { %v138_v35 = vsub.f32 1.0, %v136_v34 }
 0x11f   :  { %v141_v36 = vmul.f32 %v261_v30, %v138_v35 }
 0x121   :  { %250 = vmatmul.msk.f32.gmra.mxu3 %vm73_vm1, %v141_v36 }
 0x196   :  { %v129_v42 = vpop.f32.mrf.mxu2 }
 0x197   :  { %v130_v43 = vadd.f32 %v262_v41, %v129_v42 }
 0x199   :  { %206 = vst.msk [vmem:[#allocation2] sm:$0xff] %vm40_vm0, %v130_v43 }
 0x19c   :  { %v169_v46 = vpop.f32.mrf.mxu3 }
 0x19d   :  { %v175_v47 = vmul.f32 %v169_v46, %v144_v45 }
 0x19e   :  { %v132_v48 = vpop.f32.mrf.mxu2 }
 0x19f   :  { %v133_v49 = vadd.f32 %v262_v41, %v132_v48  ;;  %251 = vmatmul.msk.f32.vlgmr.msrb.gmra.mxu0 %vm73_vm1, %v175_v47 }
 0x1a1   :  { %207 = vst.msk [vmem:[#allocation2 + $0x8] sm:$0xff] %vm40_vm0, %v133_v49 }
 0x1a4   :  { %v172_v52 = vpop.f32.mrf.mxu3 }
 0x1a5   :  { %v176_v53 = vmul.f32 %v172_v52, %v145_v51 }
 0x1a7   :  { %252 = vmatmul.msk.f32.gmra.mxu0 %vm73_vm1, %v176_v53 }
 0x21c   :  { %v200_v55 = vpop.f32.mrf.mxu0 }
 0x21d   :  { %v214_v56 = vmul.f32 %v209_v54, %v200_v55 }
 0x21f   :  { %v216_v57 = vsel %vm40_vm0, %v214_v56, 0.0 }
 0x220   :  { %217 = vadd.xlane.f32.xlu1 %v216_v57 }
 0x224   :  { %v203_v59 = vpop.f32.mrf.mxu0 }
 0x225   :  { %v215_v60 = vmul.f32 %v211_v58, %v203_v59 }
 0x227   :  { %v219_v61 = vsel %vm40_vm0, %v215_v60, 0.0 }
 0x228   :  { %220 = vadd.xlane.f32.xlu1 %v219_v61 }
 0x293   :  { %v218_v62 = vpop.xlane.xlu1 %217 }
 0x294   :  { %223 = vst.msk [vmem:[#allocation2] sm:$0xff] %vm222_vm2, %v218_v62 }
 0x29b   :  { %v221_v63 = vpop.xlane.xlu1 %220 }
 0x29c   :  { %224 = vst.msk [vmem:[#allocation2 + $0x8] sm:$0xff] %vm222_vm2, %v221_v63 }
 0x29d   :  { %237 = dma.vmem_to_hbm [thread:$0]  %s230_s4, 256, %s232_s7, [#allocation3], %s299_s8, %s299_s8, %s300_s9  }
 0x29e   :  { %295 = dma.done.wait [#allocation3], 256  }
 0x29f   :  { %296 = vsyncadd [#allocation3], 4294967040 }
 0x2a0   :  { %242 = vsyncpa [#allocation3], 1 }

</bundles_post_ra>
